<compile_context>
chip_gen: v7x
topology: tpu7x:2x2x1
jax: 0.10.0
libtpu: 0.0.40
codegen_flags: <defaults>
</compile_context>

<pallas_src>
import jax
import jax.numpy as jnp
from jax.experimental import pallas as pl
from jax.experimental.pallas import tpu as pltpu

IN_FEATURES = 512
HIDDEN = 256
LANE = 128
SUBLANE = 8

# Stay under v5e's 16 MiB scoped-VMEM default (most restrictive generation).
_VMEM_BUDGET = 14 * 1024 * 1024


def _round_up(x, m):
    return -(-x // m) * m


def _gapfc_kernel(x_ref, w1_ref, b1_ref, w2_ref, b2_ref, o_ref):
    # x_ref: (TM, 512), w1_ref: (512, 256), b1_ref: (1, 256)
    # w2_ref: (256, C_pad), b2_ref: (1, C_pad), o_ref: (TM, C_pad)

    # Linear(512, 256) + ReLU  (Dropout is identity in eval mode).  Operands
    # are consumed in their stored dtype (bf16 or f32); accumulation is f32.
    h = jnp.dot(x_ref[...], w1_ref[...], preferred_element_type=jnp.float32)
    h = jnp.maximum(h + b1_ref[...].astype(jnp.float32), 0.0)

    # Linear(256, C_pad).  Cast h back to the weight dtype so a bf16 W2 keeps
    # the MXU in single-pass bf16 mode (no-op when everything is f32).
    y = jnp.dot(h.astype(w2_ref.dtype), w2_ref[...],
                preferred_element_type=jnp.float32)
    o_ref[...] = (y + b2_ref[...].astype(jnp.float32)).astype(o_ref.dtype)


def gapfc_forward(x, w1, b1, w2, b2, *, block_m=2048,
                  out_dtype=jnp.float32, unpad_output=True):
    """x: (N, 512). Returns (N, classes_num) in `out_dtype`.

    Compute dtype follows x.dtype (weights are cast to match); accumulation
    is always f32.  Supply bf16 x (and/or out_dtype=bf16) to halve the
    dominant HBM streams on this memory-bound layer.  Set unpad_output=False
    to skip the post-kernel class-dim slice copy and receive (N, C_pad).
    """
    n, k = x.shape
    assert k == IN_FEATURES, f"expected {IN_FEATURES} input features, got {k}"
    classes_num = w2.shape[1]

    # ---- Weight prep (tiny arrays; constant-folded under jit). -------------
    # Lane-dense class dim: pad to a multiple of 128 so GEMM2 is a clean MXU
    # tile and the output store is an unmasked vst.  Do NOT pad beyond 128
    # for small class counts (output bytes dominate over MXU fill).
    c_pad = _round_up(max(classes_num, LANE), LANE)
    if c_pad != classes_num:
        w2 = jnp.pad(w2, ((0, 0), (0, c_pad - classes_num)))
        b2 = jnp.pad(b2, ((0, 0), (0, c_pad - classes_num)))
    w1 = w1.astype(x.dtype)          # common MXU dtype with x (no silent f32
    w2 = w2.astype(x.dtype)          # promotion on mixed bf16/f32 inputs)
    b1 = b1.astype(jnp.float32)      # biases add onto the f32 accumulator
    b2 = b2.astype(jnp.float32)

    # ---- Batch tiling: NO padding copy of x; ragged last block is masked. --
    block_m = max(SUBLANE, _round_up(block_m, SUBLANE))   # defensive rounding
    tm = min(block_m, _round_up(n, SUBLANE))
    # If the whole (mid/large) batch fits one tile, split it so v7x's two
    # TensorCores both get a grid step (near-free on single-TC chips).
    if n >= 512 and _round_up(n, SUBLANE) <= block_m:
        tm = _round_up(-(-n // 2), SUBLANE)

    # Clamp tm so double-buffered x/out tiles + resident weights fit VMEM.
    x_bytes = jnp.dtype(x.dtype).itemsize
    o_bytes = jnp.dtype(out_dtype).itemsize
    w_bytes = jnp.dtype(w1.dtype).itemsize
    while tm > SUBLANE:
        need = (2 * tm * IN_FEATURES * x_bytes            # x tile, dbl-buffered
                + 2 * tm * c_pad * o_bytes                # out tile, dbl-buffered
                + 2 * (IN_FEATURES * HIDDEN + HIDDEN * c_pad) * w_bytes
                + 2 * (HIDDEN + c_pad) * 4)               # biases
        if need <= _VMEM_BUDGET:
            break
        tm = max(SUBLANE, _round_up(tm // 2, SUBLANE))

    grid = (pl.cdiv(n, tm),)

    cost = pl.CostEstimate(
        flops=2 * n * (IN_FEATURES * HIDDEN + HIDDEN * c_pad),
        bytes_accessed=(n * IN_FEATURES * x_bytes
                        + IN_FEATURES * HIDDEN * w_bytes
                        + HIDDEN * c_pad * w_bytes
                        + n * c_pad * o_bytes),
        transcendentals=0,
    )

    out = pl.pallas_call(
        _gapfc_kernel,
        out_shape=jax.ShapeDtypeStruct((n, c_pad), out_dtype),
        grid=grid,
        in_specs=[
            pl.BlockSpec((tm, IN_FEATURES), lambda i: (i, 0)),      # x tile
            pl.BlockSpec((IN_FEATURES, HIDDEN), lambda i: (0, 0)),  # w1 (resident)
            pl.BlockSpec((1, HIDDEN), lambda i: (0, 0)),            # b1 (resident)
            pl.BlockSpec((HIDDEN, c_pad), lambda i: (0, 0)),        # w2 (resident)
            pl.BlockSpec((1, c_pad), lambda i: (0, 0)),             # b2 (resident)
        ],
        out_specs=pl.BlockSpec((tm, c_pad), lambda i: (i, 0)),
        compiler_params=pltpu.CompilerParams(
            dimension_semantics=("parallel",),   # shard batch axis across TCs
        ),
        cost_estimate=cost,
    )(x, w1, b1, w2, b2)

    if unpad_output and c_pad != classes_num:
        out = out[:, :classes_num]
    return out


def init_params(key, classes_num):
    """Deterministic init mimicking torch.nn.Linear (U[-1/sqrt(fan_in), +...])."""
    k1, k2, k3, k4 = jax.random.split(key, 4)
    bound1 = 1.0 / jnp.sqrt(512.0)
    bound2 = 1.0 / jnp.sqrt(256.0)
    # Stored as (in, out) = transpose of torch's (out, in) weight layout.
    w1 = jax.random.uniform(k1, (512, 256), jnp.float32, -bound1, bound1)
    b1 = jax.random.uniform(k2, (1, 256), jnp.float32, -bound1, bound1)
    w2 = jax.random.uniform(k3, (256, classes_num), jnp.float32, -bound2, bound2)
    b2 = jax.random.uniform(k4, (1, classes_num), jnp.float32, -bound2, bound2)
    return w1, b1, w2, b2


def gapfc_reference(x, w1, b1, w2, b2):
    h = jnp.maximum(x @ w1 + b1, 0.0)
    return h @ w2 + b2


if __name__ == "__main__":
    key = jax.random.PRNGKey(0)
    k_x, k_p = jax.random.split(key)

    batch = 8
    classes_num = 10

    x = jax.random.normal(k_x, (batch, IN_FEATURES), jnp.float32)
    w1, b1, w2, b2 = init_params(k_p, classes_num)
    ref = gapfc_reference(x, w1, b1, w2, b2)

    # Single-tile f32 path.
    out = jax.block_until_ready(gapfc_forward(x, w1, b1, w2, b2))
    assert out.shape == (batch, classes_num)
    assert jnp.allclose(out, ref, atol=1e-4, rtol=1e-4), "mismatch vs reference"

    # Multi-step grid + ragged (non-multiple-of-8) batch, no wrapper-side pad.
    batch2 = 1030
    x2 = jax.random.normal(k_x, (batch2, IN_FEATURES), jnp.float32)
    out2 = jax.block_until_ready(gapfc_forward(x2, w1, b1, w2, b2))
    ref2 = gapfc_reference(x2, w1, b1, w2, b2)
    assert out2.shape == (batch2, classes_num)
    assert jnp.allclose(out2, ref2, atol=1e-4, rtol=1e-4), "mismatch (tiled)"

    # bf16 input path (single-pass MXU, halved x stream); loose tolerance.
    out3 = jax.block_until_ready(
        gapfc_forward(x.astype(jnp.bfloat16), w1, b1, w2, b2))
    assert out3.shape == (batch, classes_num)
    assert jnp.allclose(out3, ref, atol=5e-2, rtol=5e-2), "mismatch (bf16)"

    print("KERNEL_OK")
</pallas_src>

<mosaic_0001>
module attributes {stable_mosaic.version = 11 : i64} {
  func.func @_gapfc_kernel(%arg0: i32, %arg1: memref<8x512xf32, #tpu.memory_space<vmem>>, %arg2: memref<512x256xf32, #tpu.memory_space<vmem>>, %arg3: memref<1x256xf32, #tpu.memory_space<vmem>>, %arg4: memref<256x128xf32, #tpu.memory_space<vmem>>, %arg5: memref<1x128xf32, #tpu.memory_space<vmem>>, %arg6: memref<8x128xf32, #tpu.memory_space<vmem>>) attributes {dimension_semantics = [#tpu.dimension_semantics<parallel>], iteration_bounds = array<i64: 1>, scalar_prefetch = 0 : i64, scratch_operands = 0 : i64, tpu.core_type = #tpu.core_type<tc>, window_params = [{transform_indices = @transform_0, window_bounds = array<i64: 8, 512>}, {pipeline_mode = #tpu.pipeline_mode<synchronous>, transform_indices = @transform_1, window_bounds = array<i64: 512, 256>}, {pipeline_mode = #tpu.pipeline_mode<synchronous>, transform_indices = @transform_2, window_bounds = array<i64: 1, 256>}, {pipeline_mode = #tpu.pipeline_mode<synchronous>, transform_indices = @transform_3, window_bounds = array<i64: 256, 128>}, {pipeline_mode = #tpu.pipeline_mode<synchronous>, transform_indices = @transform_4, window_bounds = array<i64: 1, 128>}, {transform_indices = @transform_5, window_bounds = array<i64: 8, 128>}]} {
    %c0 = arith.constant 0 : index
    %c0_0 = arith.constant 0 : index
    %0 = vector.load %arg1[%c0, %c0_0] : memref<8x512xf32, #tpu.memory_space<vmem>>, vector<8x512xf32>
    %c0_1 = arith.constant 0 : index
    %c0_2 = arith.constant 0 : index
    %1 = vector.load %arg2[%c0_1, %c0_2] : memref<512x256xf32, #tpu.memory_space<vmem>>, vector<512x256xf32>
    %cst = arith.constant dense<0.000000e+00> : vector<8x256xf32>
    %2 = tpu.matmul %0, %1, %cst {dimension_numbers = #tpu.dot_dimension_numbers<[1], [0], [0], [1], [0, 0, 1, 1], [], []>} : vector<8x512xf32>, vector<512x256xf32>, vector<8x256xf32> -> vector<8x256xf32>
    %c0_3 = arith.constant 0 : index
    %c0_4 = arith.constant 0 : index
    %3 = vector.load %arg3[%c0_3, %c0_4] : memref<1x256xf32, #tpu.memory_space<vmem>>, vector<1x256xf32>
    %4 = vector.broadcast %3 : vector<1x256xf32> to vector<8x256xf32>
    %5 = arith.addf %2, %4 : vector<8x256xf32>
    %cst_5 = arith.constant 0.000000e+00 : f32
    %6 = vector.broadcast %cst_5 : f32 to vector<8x256xf32>
    %7 = arith.maximumf %5, %6 : vector<8x256xf32>
    %c0_6 = arith.constant 0 : index
    %c0_7 = arith.constant 0 : index
    %8 = vector.load %arg4[%c0_6, %c0_7] : memref<256x128xf32, #tpu.memory_space<vmem>>, vector<256x128xf32>
    %cst_8 = arith.constant dense<0.000000e+00> : vector<8x128xf32>
    %9 = tpu.matmul %7, %8, %cst_8 {dimension_numbers = #tpu.dot_dimension_numbers<[1], [0], [0], [1], [0, 0, 1, 1], [], []>} : vector<8x256xf32>, vector<256x128xf32>, vector<8x128xf32> -> vector<8x128xf32>
    %c0_9 = arith.constant 0 : index
    %c0_10 = arith.constant 0 : index
    %10 = vector.load %arg5[%c0_9, %c0_10] : memref<1x128xf32, #tpu.memory_space<vmem>>, vector<1x128xf32>
    %11 = vector.broadcast %10 : vector<1x128xf32> to vector<8x128xf32>
    %12 = arith.addf %9, %11 : vector<8x128xf32>
    %c0_11 = arith.constant 0 : index
    %c0_12 = arith.constant 0 : index
    %13 = vector.load %arg6[%c0_11, %c0_12] : memref<8x128xf32, #tpu.memory_space<vmem>>, vector<8x128xf32>
    tpu.vector_store %arg6[%c0_11, %c0_12], %12 {strides = array<i32>} : memref<8x128xf32, #tpu.memory_space<vmem>>, vector<8x128xf32>,
    return
  }
  func.func @transform_0(%arg0: i32) -> (i32, i32) {
    %c0_i32 = arith.constant 0 : i32
    %c0_i32_0 = arith.constant 0 : i32
    return %arg0, %c0_i32 : i32, i32
  }
  func.func @transform_1(%arg0: i32) -> (i32, i32) {
    %c0_i32 = arith.constant 0 : i32
    %c0_i32_0 = arith.constant 0 : i32
    %c0_i32_1 = arith.constant 0 : i32
    return %c0_i32, %c0_i32_0 : i32, i32
  }
  func.func @transform_2(%arg0: i32) -> (i32, i32) {
    %c0_i32 = arith.constant 0 : i32
    %c0_i32_0 = arith.constant 0 : i32
    %c0_i32_1 = arith.constant 0 : i32
    return %c0_i32, %c0_i32_0 : i32, i32
  }
  func.func @transform_3(%arg0: i32) -> (i32, i32) {
    %c0_i32 = arith.constant 0 : i32
    %c0_i32_0 = arith.constant 0 : i32
    %c0_i32_1 = arith.constant 0 : i32
    return %c0_i32, %c0_i32_0 : i32, i32
  }
  func.func @transform_4(%arg0: i32) -> (i32, i32) {
    %c0_i32 = arith.constant 0 : i32
    %c0_i32_0 = arith.constant 0 : i32
    %c0_i32_1 = arith.constant 0 : i32
    return %c0_i32, %c0_i32_0 : i32, i32
  }
  func.func @transform_5(%arg0: i32) -> (i32, i32) {
    %c0_i32 = arith.constant 0 : i32
    %c0_i32_0 = arith.constant 0 : i32
    return %arg0, %c0_i32 : i32, i32
  }
}

</mosaic_0001>

<bundles_post_ra>
// kernel: tpu_custom_call.1
= control target key start
LH: loop header
LB: loop body
LE: loop exit
PB: predicated region body
PF: predicated region fallthrough
CT: control target
= control target key end

     0   :  { %10 = vsyncpa [#allocation3], 0  ;;  %s868_s0 = inlined_call_operand.hbm [shape: f32[8,512], index: 0, kind: input, shape index: {}]   ;;  %s869_s1 = inlined_call_operand.hbm [shape: f32[512,256], index: 1, kind: input, shape index: {}]   ;;  %s870_s2 = inlined_call_operand.vmem [shape: f32[1,256], index: 2, kind: input, shape index: {}]   ;;  %s871_s3 = inlined_call_operand.hbm [shape: f32[256,128], index: 3, kind: input, shape index: {}]   ;;  %s872_s4 = inlined_call_operand.vmem [shape: f32[1,128], index: 4, kind: input, shape index: {}]   ;;  %s873_s5 = inlined_call_operand.hbm [shape: f32[8,128], index: 5, kind: output, shape index: {}]  }
   0x1   :  { %11 = vsyncpa [#allocation6], 0 }
   0x2   :  { %12 = vsyncpa [#allocation4], 0  ;;  %s776_s18 = smov [#allocation5]   ;;  %s682_s22 = scalar_lea.hbm %s869_s1, 16384 }
   0x3   :  { %s28_s19 = sshll.u32 %s776_s18, 4  ;;  %p683_p0 = scmp.ne.s32.totalorder %s869_s1, %s682_s22  ;;  %s29_s19 = int_to_ptr.vmem [resolvable:$true] %s28_s19 }
   0x4   :  { %p686_p1 = scmp.lt.u32.totalorder %s682_s22, %s869_s1 }
   0x6   :  { %p688_p2 = pnand %p686_p1, %p683_p0 }
   0x8   :  { %691 = shalt.err (!%p688_p2)
}
   0x9   :  { %s692_s27 = scalar_lea.vmem %s29_s19, 16384  ;;  %p697_p4 = scmp.lt.s32.totalorder %s29_s19, %s29_s19 }
   0xa   :  { %p693_p3 = scmp.ne.s32.totalorder %s29_s19, %s692_s27  ;;  %p698_p5 = scmp.lt.s32.totalorder %s692_s27, %s692_s27 }
   0xc   :  { %p699_p6 = por %p698_p5, %p697_p4 }
   0xe   :  { %p700_p7 = pnand %p699_p6, %p693_p3 }
  0x10   :  { %703 = shalt.err (!%p700_p7)
}
  0x11   :  { %s777_s28 = smov 256   ;;  %s778_s29 = smov 16  }
  0x12   :  { %34 = dma.hbm_to_vmem [thread:$0]  %s869_s1, 16384, %s29_s19, [#allocation6], %s777_s28, %s777_s28, %s778_s29  }
  0x13   :  { %s779_s7 = smov [#allocation2]   ;;  %s780_s9 = smov [#allocation7]  }
  0x14   :  { %s19_s8 = sshll.u32 %s779_s7, 4  ;;  %s42_s10 = sshll.u32 %s780_s9, 4  ;;  %s20_s8 = int_to_ptr.vmem [resolvable:$true] %s19_s8  ;;  %s43_s10 = int_to_ptr.vmem [resolvable:$true] %s42_s10 }
  0x15   :  { %s704_s13 = scalar_lea.hbm %s868_s0, 512 }
  0x16   :  { %p705_p8 = scmp.ne.s32.totalorder %s868_s0, %s704_s13  ;;  %p708_p9 = scmp.lt.u32.totalorder %s704_s13, %s868_s0 }
  0x18   :  { %p710_p10 = pnand %p708_p9, %p705_p8 }
  0x1a   :  { %713 = shalt.err (!%p710_p10)
}
  0x1b   :  { %s714_s1 = scalar_lea.vmem %s20_s8, 512  ;;  %p719_p12 = scmp.lt.s32.totalorder %s20_s8, %s20_s8 }
  0x1c   :  { %p715_p11 = scmp.ne.s32.totalorder %s20_s8, %s714_s1  ;;  %p720_p13 = scmp.lt.s32.totalorder %s714_s1, %s714_s1 }
  0x1e   :  { %p721_p0 = por %p720_p13, %p719_p12 }
  0x20   :  { %p722_p1 = pnand %p721_p0, %p715_p11 }
  0x22   :  { %725 = shalt.err (!%p722_p1)
}
  0x23   :  { %22 = dma.hbm_to_vmem [thread:$0]  %s868_s0, 512, %s20_s8, [#allocation3]  }
  0x24   :  { %s726_s22 = scalar_lea.hbm %s871_s3, 4096 }
  0x25   :  { %p727_p2 = scmp.ne.s32.totalorder %s871_s3, %s726_s22  ;;  %p730_p3 = scmp.lt.u32.totalorder %s726_s22, %s871_s3 }
  0x27   :  { %p732_p4 = pnand %p730_p3, %p727_p2 }
  0x29   :  { %735 = shalt.err (!%p732_p4)
}
  0x2a   :  { %s736_s27 = scalar_lea.vmem %s43_s10, 4096  ;;  %p741_p6 = scmp.lt.s32.totalorder %s43_s10, %s43_s10 }
  0x2b   :  { %p737_p5 = scmp.ne.s32.totalorder %s43_s10, %s736_s27  ;;  %p742_p7 = scmp.lt.s32.totalorder %s736_s27, %s736_s27 }
  0x2d   :  { %p743_p8 = por %p742_p7, %p741_p6 }
  0x2f   :  { %p744_p9 = pnand %p743_p8, %p737_p5 }
  0x31   :  { %747 = shalt.err (!%p744_p9)
}
  0x32   :  { %s781_s0 = smov 128   ;;  %s782_s28 = smov 8  }
  0x33   :  { %48 = dma.hbm_to_vmem [thread:$0]  %s871_s3, 4096, %s43_s10, [#allocation6], %s781_s0, %s781_s0, %s782_s28  }
  0x34   :  { %770 = dma.done.wait [#allocation3], 512  }
  0x35   :  { %771 = vsyncadd [#allocation3], 4294966784 }
  0x36   :  { %772 = dma.done.wait [#allocation6], 20480  }
  0x37   :  { %773 = vsyncadd [#allocation6], 4294946816  ;;  %v65_v0 = vld [vmem:[#allocation5 + $0x8] sm:$0xff]  ;;  %v67_v1 = vld [vmem:[#allocation5 + $0x18] sm:$0xff] }
  0x38   :  { %v64_v2 = vld [vmem:[#allocation5] sm:$0xff]  ;;  %v510_v3 = vpack.c.bf16 %v67_v1, %v65_v0  ;;  %v66_v4 = vld [vmem:[#allocation5 + $0x10] sm:$0xff]  ;;  %v129_v5 = vld [vmem:[#allocation5 + $0x208] sm:$0xff] }
  0x39   :  { %v131_v6 = vld [vmem:[#allocation5 + $0x218] sm:$0xff]  ;;  %v512_v7 = vpack.c.bf16 %v66_v4, %v64_v2  ;;  %v128_v9 = vld [vmem:[#allocation5 + $0x200] sm:$0xff]  ;;  %v130_v10 = vld [vmem:[#allocation5 + $0x210] sm:$0xff] }
  0x3a   :  { %v574_v8 = vpack.c.bf16 %v131_v6, %v129_v5  ;;  %v69_v11 = vld [vmem:[#allocation5 + $0x28] sm:$0xff]  ;;  %511 = vmatprep.subr.bf16.mxu1 %v510_v3  ;;  %v576_v12 = vpack.c.bf16 %v130_v10, %v128_v9  ;;  %v71_v13 = vld [vmem:[#allocation5 + $0x38] sm:$0xff]  ;;  %v68_v14 = vld [vmem:[#allocation5 + $0x20] sm:$0xff] }
  0x3b   :  { %v70_v15 = vld [vmem:[#allocation5 + $0x30] sm:$0xff]  ;;  %513 = vmatpush1.bf16.msra.mxu1 %v512_v7  ;;  %v514_v16 = vpack.c.bf16 %v71_v13, %v69_v11  ;;  %v133_v18 = vld [vmem:[#allocation5 + $0x228] sm:$0xff]  ;;  %v135_v19 = vld [vmem:[#allocation5 + $0x238] sm:$0xff] }
  0x3c   :  { %575 = vmatprep.subr.bf16.mxu0 %v574_v8  ;;  %v516_v17 = vpack.c.bf16 %v70_v15, %v68_v14  ;;  %v132_v20 = vld [vmem:[#allocation5 + $0x220] sm:$0xff]  ;;  %v578_v21 = vpack.c.bf16 %v135_v19, %v133_v18  ;;  %v134_v22 = vld [vmem:[#allocation5 + $0x230] sm:$0xff]  ;;  %v73_v23 = vld [vmem:[#allocation5 + $0x48] sm:$0xff] }
  0x3d   :  { %577 = vmatpush1.bf16.msra.mxu0 %v576_v12  ;;  %v75_v24 = vld [vmem:[#allocation5 + $0x58] sm:$0xff]  ;;  %515 = vmatprep.subr.bf16.mxu1 %v514_v16  ;;  %v580_v25 = vpack.c.bf16 %v134_v22, %v132_v20  ;;  %v72_v27 = vld [vmem:[#allocation5 + $0x40] sm:$0xff]  ;;  %v74_v28 = vld [vmem:[#allocation5 + $0x50] sm:$0xff] }
  0x3e   :  { %v518_v26 = vpack.c.bf16 %v75_v24, %v73_v23  ;;  %v137_v29 = vld [vmem:[#allocation5 + $0x248] sm:$0xff]  ;;  %579 = vmatprep.subr.bf16.mxu0 %v578_v21  ;;  %v139_v30 = vld [vmem:[#allocation5 + $0x258] sm:$0xff]  ;;  %v136_v31 = vld [vmem:[#allocation5 + $0x240] sm:$0xff]  ;;  %v520_v33 = vpack.c.bf16 %v74_v28, %v72_v27 }
  0x3f   :  { %v138_v32 = vld [vmem:[#allocation5 + $0x250] sm:$0xff]  ;;  %517 = vmatpush1.bf16.msra.mxu1 %v516_v17  ;;  %v582_v34 = vpack.c.bf16 %v139_v30, %v137_v29  ;;  %v77_v35 = vld [vmem:[#allocation5 + $0x68] sm:$0xff]  ;;  %v79_v36 = vld [vmem:[#allocation5 + $0x78] sm:$0xff] }
  0x40   :  { %v76_v37 = vld [vmem:[#allocation5 + $0x60] sm:$0xff]  ;;  %519 = vmatprep.subr.bf16.mxu1 %v518_v26  ;;  %v584_v38 = vpack.c.bf16 %v138_v32, %v136_v31  ;;  %v522_v39 = vpack.c.bf16 %v79_v36, %v77_v35  ;;  %v78_v40 = vld [vmem:[#allocation5 + $0x70] sm:$0xff]  ;;  %v141_v41 = vld [vmem:[#allocation5 + $0x268] sm:$0xff] }
  0x41   :  { %581 = vmatpush1.bf16.msra.mxu0 %v580_v25  ;;  %v143_v42 = vld [vmem:[#allocation5 + $0x278] sm:$0xff]  ;;  %v140_v44 = vld [vmem:[#allocation5 + $0x260] sm:$0xff]  ;;  %v142_v45 = vld [vmem:[#allocation5 + $0x270] sm:$0xff]  ;;  %v524_v48 = vpack.c.bf16 %v78_v40, %v76_v37 }
  0x42   :  { %583 = vmatprep.subr.bf16.mxu0 %v582_v34  ;;  %v586_v43 = vpack.c.bf16 %v143_v42, %v141_v41  ;;  %v81_v46 = vld [vmem:[#allocation5 + $0x88] sm:$0xff]  ;;  %v83_v47 = vld [vmem:[#allocation5 + $0x98] sm:$0xff]  ;;  %v588_v51 = vpack.c.bf16 %v142_v45, %v140_v44  ;;  %v80_v53 = vld [vmem:[#allocation5 + $0x80] sm:$0xff] }
  0x43   :  { %521 = vmatpush1.bf16.msra.mxu1 %v520_v33  ;;  %v145_v49 = vld [vmem:[#allocation5 + $0x288] sm:$0xff]  ;;  %v147_v50 = vld [vmem:[#allocation5 + $0x298] sm:$0xff]  ;;  %v526_v52 = vpack.c.bf16 %v83_v47, %v81_v46  ;;  %v82_v54 = vld [vmem:[#allocation5 + $0x90] sm:$0xff] }
  0x44   :  { %523 = vmatprep.subr.bf16.mxu1 %v522_v39  ;;  %v144_v55 = vld [vmem:[#allocation5 + $0x280] sm:$0xff]  ;;  %v590_v56 = vpack.c.bf16 %v147_v50, %v145_v49  ;;  %v146_v57 = vld [vmem:[#allocation5 + $0x290] sm:$0xff]  ;;  %v85_v58 = vld [vmem:[#allocation5 + $0xa8] sm:$0xff]  ;;  %v528_v62 = vpack.c.bf16 %v82_v54, %v80_v53 }
  0x45   :  { %585 = vmatpush1.bf16.msra.mxu0 %v584_v38  ;;  %v87_v59 = vld [vmem:[#allocation5 + $0xb8] sm:$0xff]  ;;  %v149_v60 = vld [vmem:[#allocation5 + $0x2a8] sm:$0xff]  ;;  %v592_v63 = vpack.c.bf16 %v146_v57, %v144_v55  ;;  %v84_v1 = vld [vmem:[#allocation5 + $0xa0] sm:$0xff] }
  0x46   :  { %587 = vmatprep.subr.bf16.mxu0 %v586_v43  ;;  %v151_v61 = vld [vmem:[#allocation5 + $0x2b8] sm:$0xff]  ;;  %v530_v0 = vpack.c.bf16 %v87_v59, %v85_v58  ;;  %v86_v2 = vld [vmem:[#allocation5 + $0xb0] sm:$0xff]  ;;  %v148_v3 = vld [vmem:[#allocation5 + $0x2a0] sm:$0xff] }
  0x47   :  { %525 = vmatpush1.bf16.msra.mxu1 %v524_v48  ;;  %v594_v4 = vpack.c.bf16 %v151_v61, %v149_v60  ;;  %v150_v5 = vld [vmem:[#allocation5 + $0x2b0] sm:$0xff]  ;;  %v89_v6 = vld [vmem:[#allocation5 + $0xc8] sm:$0xff]  ;;  %v91_v7 = vld [vmem:[#allocation5 + $0xd8] sm:$0xff]  ;;  %v532_v10 = vpack.c.bf16 %v86_v2, %v84_v1 }
  0x48   :  { %527 = vmatprep.subr.bf16.mxu1 %v526_v52  ;;  %v153_v8 = vld [vmem:[#allocation5 + $0x2c8] sm:$0xff]  ;;  %v155_v9 = vld [vmem:[#allocation5 + $0x2d8] sm:$0xff]  ;;  %v596_v11 = vpack.c.bf16 %v150_v5, %v148_v3  ;;  %v534_v12 = vpack.c.bf16 %v91_v7, %v89_v6  ;;  %v88_v13 = vld [vmem:[#allocation5 + $0xc0] sm:$0xff] }
  0x49   :  { %589 = vmatpush1.bf16.msra.mxu0 %v588_v51  ;;  %v90_v14 = vld [vmem:[#allocation5 + $0xd0] sm:$0xff]  ;;  %v152_v15 = vld [vmem:[#allocation5 + $0x2c0] sm:$0xff]  ;;  %v598_v16 = vpack.c.bf16 %v155_v9, %v153_v8  ;;  %v93_v18 = vld [vmem:[#allocation5 + $0xe8] sm:$0xff] }
  0x4a   :  { %591 = vmatprep.subr.bf16.mxu0 %v590_v56  ;;  %v154_v17 = vld [vmem:[#allocation5 + $0x2d0] sm:$0xff]  ;;  %v95_v19 = vld [vmem:[#allocation5 + $0xf8] sm:$0xff]  ;;  %v157_v20 = vld [vmem:[#allocation5 + $0x2e8] sm:$0xff]  ;;  %v536_v22 = vpack.c.bf16 %v90_v14, %v88_v13 }
  0x4b   :  { %529 = vmatpush1.bf16.msra.mxu1 %v528_v62  ;;  %v159_v21 = vld [vmem:[#allocation5 + $0x2f8] sm:$0xff]  ;;  %v600_v23 = vpack.c.bf16 %v154_v17, %v152_v15  ;;  %v538_v24 = vpack.c.bf16 %v95_v19, %v93_v18  ;;  %v92_v25 = vld [vmem:[#allocation5 + $0xe0] sm:$0xff]  ;;  %v94_v26 = vld [vmem:[#allocation5 + $0xf0] sm:$0xff] }
  0x4c   :  { %531 = vmatprep.subr.bf16.mxu1 %v530_v0  ;;  %v156_v27 = vld [vmem:[#allocation5 + $0x2e0] sm:$0xff]  ;;  %v602_v28 = vpack.c.bf16 %v159_v21, %v157_v20  ;;  %v158_v29 = vld [vmem:[#allocation5 + $0x2f0] sm:$0xff]  ;;  %v97_v30 = vld [vmem:[#allocation5 + $0x108] sm:$0xff]  ;;  %v540_v34 = vpack.c.bf16 %v94_v26, %v92_v25 }
  0x4d   :  { %593 = vmatpush1.bf16.msra.mxu0 %v592_v63  ;;  %v99_v31 = vld [vmem:[#allocation5 + $0x118] sm:$0xff]  ;;  %v161_v32 = vld [vmem:[#allocation5 + $0x308] sm:$0xff]  ;;  %v604_v35 = vpack.c.bf16 %v158_v29, %v156_v27  ;;  %v96_v37 = vld [vmem:[#allocation5 + $0x100] sm:$0xff] }
  0x4e   :  { %595 = vmatprep.subr.bf16.mxu0 %v594_v4  ;;  %v163_v33 = vld [vmem:[#allocation5 + $0x318] sm:$0xff]  ;;  %v542_v36 = vpack.c.bf16 %v99_v31, %v97_v30  ;;  %v98_v38 = vld [vmem:[#allocation5 + $0x110] sm:$0xff]  ;;  %v160_v39 = vld [vmem:[#allocation5 + $0x300] sm:$0xff] }
  0x4f   :  { %533 = vmatpush1.bf16.msra.mxu1 %v532_v10  ;;  %v606_v40 = vpack.c.bf16 %v163_v33, %v161_v32  ;;  %v162_v41 = vld [vmem:[#allocation5 + $0x310] sm:$0xff]  ;;  %v101_v42 = vld [vmem:[#allocation5 + $0x128] sm:$0xff]  ;;  %v103_v43 = vld [vmem:[#allocation5 + $0x138] sm:$0xff]  ;;  %v544_v46 = vpack.c.bf16 %v98_v38, %v96_v37 }
  0x50   :  { %535 = vmatprep.subr.bf16.mxu1 %v534_v12  ;;  %v165_v44 = vld [vmem:[#allocation5 + $0x328] sm:$0xff]  ;;  %v167_v45 = vld [vmem:[#allocation5 + $0x338] sm:$0xff]  ;;  %v608_v47 = vpack.c.bf16 %v162_v41, %v160_v39  ;;  %v546_v48 = vpack.c.bf16 %v103_v43, %v101_v42  ;;  %v100_v49 = vld [vmem:[#allocation5 + $0x120] sm:$0xff] }
  0x51   :  { %597 = vmatpush1.bf16.msra.mxu0 %v596_v11  ;;  %v102_v50 = vld [vmem:[#allocation5 + $0x130] sm:$0xff]  ;;  %v164_v51 = vld [vmem:[#allocation5 + $0x320] sm:$0xff]  ;;  %v610_v52 = vpack.c.bf16 %v167_v45, %v165_v44  ;;  %v105_v54 = vld [vmem:[#allocation5 + $0x148] sm:$0xff] }
  0x52   :  { %599 = vmatprep.subr.bf16.mxu0 %v598_v16  ;;  %v166_v53 = vld [vmem:[#allocation5 + $0x330] sm:$0xff]  ;;  %v107_v55 = vld [vmem:[#allocation5 + $0x158] sm:$0xff]  ;;  %v169_v56 = vld [vmem:[#allocation5 + $0x348] sm:$0xff]  ;;  %v548_v58 = vpack.c.bf16 %v102_v50, %v100_v49 }
  0x53   :  { %537 = vmatpush1.bf16.msra.mxu1 %v536_v22  ;;  %v171_v57 = vld [vmem:[#allocation5 + $0x358] sm:$0xff]  ;;  %v612_v59 = vpack.c.bf16 %v166_v53, %v164_v51  ;;  %v550_v60 = vpack.c.bf16 %v107_v55, %v105_v54  ;;  %v104_v61 = vld [vmem:[#allocation5 + $0x140] sm:$0xff]  ;;  %v106_v62 = vld [vmem:[#allocation5 + $0x150] sm:$0xff] }
  0x54   :  { %539 = vmatprep.subr.bf16.mxu1 %v538_v24  ;;  %v168_v63 = vld [vmem:[#allocation5 + $0x340] sm:$0xff]  ;;  %v614_v0 = vpack.c.bf16 %v171_v57, %v169_v56  ;;  %v170_v1 = vld [vmem:[#allocation5 + $0x350] sm:$0xff]  ;;  %v109_v2 = vld [vmem:[#allocation5 + $0x168] sm:$0xff]  ;;  %v552_v6 = vpack.c.bf16 %v106_v62, %v104_v61 }
  0x55   :  { %601 = vmatpush1.bf16.msra.mxu0 %v600_v23  ;;  %v111_v3 = vld [vmem:[#allocation5 + $0x178] sm:$0xff]  ;;  %v173_v4 = vld [vmem:[#allocation5 + $0x368] sm:$0xff]  ;;  %v108_v7 = vld [vmem:[#allocation5 + $0x160] sm:$0xff]  ;;  %v616_v8 = vpack.c.bf16 %v170_v1, %v168_v63 }
  0x56   :  { %603 = vmatprep.subr.bf16.mxu0 %v602_v28  ;;  %v175_v5 = vld [vmem:[#allocation5 + $0x378] sm:$0xff]  ;;  %v554_v9 = vpack.c.bf16 %v111_v3, %v109_v2  ;;  %v110_v10 = vld [vmem:[#allocation5 + $0x170] sm:$0xff]  ;;  %v172_v11 = vld [vmem:[#allocation5 + $0x360] sm:$0xff] }
  0x57   :  { %541 = vmatpush1.bf16.msra.mxu1 %v540_v34  ;;  %v174_v12 = vld [vmem:[#allocation5 + $0x370] sm:$0xff]  ;;  %v618_v13 = vpack.c.bf16 %v175_v5, %v173_v4  ;;  %v113_v14 = vld [vmem:[#allocation5 + $0x188] sm:$0xff]  ;;  %v115_v15 = vld [vmem:[#allocation5 + $0x198] sm:$0xff]  ;;  %v556_v20 = vpack.c.bf16 %v110_v10, %v108_v7 }
  0x58   :  { %543 = vmatprep.subr.bf16.mxu1 %v542_v36  ;;  %v61_v16 = vld [vmem:[#allocation2 + $0x8] sm:$0xff]  ;;  %v179_v18 = vld [vmem:[#allocation5 + $0x398] sm:$0xff]  ;;  %v620_v21 = vpack.c.bf16 %v174_v12, %v172_v11  ;;  %v558_v22 = vpack.c.bf16 %v115_v15, %v113_v14  ;;  %v112_v23 = vld [vmem:[#allocation5 + $0x180] sm:$0xff] }
  0x59   :  { %605 = vmatpush1.bf16.msra.mxu0 %v604_v35  ;;  %v177_v17 = vld [vmem:[#allocation5 + $0x388] sm:$0xff]  ;;  %268 = vmatprep.mubr.f32.mxu1 %v61_v16  ;;  %v63_v19 = vld [vmem:[#allocation2 + $0x18] sm:$0xff]  ;;  %v114_v24 = vld [vmem:[#allocation5 + $0x190] sm:$0xff] }
  0x5a   :  { %607 = vmatprep.subr.bf16.mxu0 %v606_v40  ;;  %339 = vmatprep.mubr.f32.mxu0 %v63_v19  ;;  %v176_v25 = vld [vmem:[#allocation5 + $0x380] sm:$0xff]  ;;  %v622_v26 = vpack.c.bf16 %v179_v18, %v177_v17  ;;  %v178_v27 = vld [vmem:[#allocation5 + $0x390] sm:$0xff]  ;;  %v117_v28 = vld [vmem:[#allocation5 + $0x1a8] sm:$0xff]  ;;  %v560_v32 = vpack.c.bf16 %v114_v24, %v112_v23 }
  0x5b   :  { %545 = vmatpush1.bf16.msra.mxu1 %v544_v46  ;;  %v119_v29 = vld [vmem:[#allocation5 + $0x1b8] sm:$0xff]  ;;  %v181_v30 = vld [vmem:[#allocation5 + $0x3a8] sm:$0xff]  ;;  %v624_v33 = vpack.c.bf16 %v178_v27, %v176_v25  ;;  %v116_v35 = vld [vmem:[#allocation5 + $0x1a0] sm:$0xff] }
  0x5c   :  { %547 = vmatprep.subr.bf16.mxu1 %v546_v48  ;;  %v183_v31 = vld [vmem:[#allocation5 + $0x3b8] sm:$0xff]  ;;  %v562_v34 = vpack.c.bf16 %v119_v29, %v117_v28  ;;  %v118_v36 = vld [vmem:[#allocation5 + $0x1b0] sm:$0xff]  ;;  %v180_v37 = vld [vmem:[#allocation5 + $0x3a0] sm:$0xff] }
  0x5d   :  { %609 = vmatpush1.bf16.msra.mxu0 %v608_v47  ;;  %v626_v38 = vpack.c.bf16 %v183_v31, %v181_v30  ;;  %v182_v39 = vld [vmem:[#allocation5 + $0x3b0] sm:$0xff]  ;;  %v121_v40 = vld [vmem:[#allocation5 + $0x1c8] sm:$0xff]  ;;  %v123_v41 = vld [vmem:[#allocation5 + $0x1d8] sm:$0xff]  ;;  %v564_v44 = vpack.c.bf16 %v118_v36, %v116_v35 }
  0x5e   :  { %611 = vmatprep.subr.bf16.mxu0 %v610_v52  ;;  %v185_v42 = vld [vmem:[#allocation5 + $0x3c8] sm:$0xff]  ;;  %v187_v43 = vld [vmem:[#allocation5 + $0x3d8] sm:$0xff]  ;;  %v628_v45 = vpack.c.bf16 %v182_v39, %v180_v37  ;;  %v566_v46 = vpack.c.bf16 %v123_v41, %v121_v40  ;;  %v120_v47 = vld [vmem:[#allocation5 + $0x1c0] sm:$0xff] }
  0x5f   :  { %549 = vmatpush1.bf16.msra.mxu1 %v548_v58  ;;  %v122_v48 = vld [vmem:[#allocation5 + $0x1d0] sm:$0xff]  ;;  %v184_v49 = vld [vmem:[#allocation5 + $0x3c0] sm:$0xff]  ;;  %v630_v50 = vpack.c.bf16 %v187_v43, %v185_v42  ;;  %v125_v52 = vld [vmem:[#allocation5 + $0x1e8] sm:$0xff] }
  0x60   :  { %551 = vmatprep.subr.bf16.mxu1 %v550_v60  ;;  %v186_v51 = vld [vmem:[#allocation5 + $0x3d0] sm:$0xff]  ;;  %v127_v53 = vld [vmem:[#allocation5 + $0x1f8] sm:$0xff]  ;;  %v189_v54 = vld [vmem:[#allocation5 + $0x3e8] sm:$0xff]  ;;  %v568_v56 = vpack.c.bf16 %v122_v48, %v120_v47 }
  0x61   :  { %613 = vmatpush1.bf16.msra.mxu0 %v612_v59  ;;  %v191_v55 = vld [vmem:[#allocation5 + $0x3f8] sm:$0xff]  ;;  %v632_v57 = vpack.c.bf16 %v186_v51, %v184_v49  ;;  %v570_v58 = vpack.c.bf16 %v127_v53, %v125_v52  ;;  %v124_v59 = vld [vmem:[#allocation5 + $0x1e0] sm:$0xff]  ;;  %v126_v60 = vld [vmem:[#allocation5 + $0x1f0] sm:$0xff]  ;;  %v194_v52 = vlaneseq }
  0x62   :  { %615 = vmatprep.subr.bf16.mxu0 %v614_v0  ;;  %v188_v61 = vld [vmem:[#allocation5 + $0x3e0] sm:$0xff]  ;;  %v634_v62 = vpack.c.bf16 %v191_v55, %v189_v54  ;;  %v190_v63 = vld [vmem:[#allocation5 + $0x3f0] sm:$0xff]  ;;  %v365_v1 = vld [vmem:[#allocation7 + $0x88] sm:$0xff]  ;;  %v572_v2 = vpack.c.bf16 %v126_v60, %v124_v59 }
  0x63   :  { %553 = vmatpush1.bf16.msra.mxu1 %v552_v6  ;;  %v364_v0 = vld [vmem:[#allocation7 + $0x80] sm:$0xff]  ;;  %v636_v3 = vpack.c.bf16 %v190_v63, %v188_v61  ;;  %v349_v6 = vld [vmem:[#allocation7 + $0x8] sm:$0xff]  ;;  %v366_v7 = vld [vmem:[#allocation7 + $0x90] sm:$0xff]  ;;  %v195_v53 = vshrl.u32 %v194_v52, 7 }
  0x64   :  { %555 = vmatprep.subr.bf16.mxu1 %v554_v9  ;;  %v638_v4 = vpack.c.bf16 %v365_v1, %v364_v0  ;;  %v348_v5 = vld [vmem:[#allocation7] sm:$0xff]  ;;  %v62_v11 = vld [vmem:[#allocation2 + $0x10] sm:$0xff]  ;;  %v351_v14 = vld [vmem:[#allocation7 + $0x18] sm:$0xff] }
  0x65   :  { %617 = vmatpush1.bf16.msra.mxu0 %v616_v8  ;;  %v367_v8 = vld [vmem:[#allocation7 + $0x98] sm:$0xff]  ;;  %v60_v9 = vld [vmem:[#allocation2] sm:$0xff]  ;;  %v640_v10 = vpack.c.bf16 %v349_v6, %v348_v5  ;;  %v369_v16 = vld [vmem:[#allocation7 + $0xa8] sm:$0xff]  ;;  %v196_v54 = vsub.s32 0, %v195_v53 }
  0x66   :  { %619 = vmatprep.subr.bf16.mxu0 %v618_v13  ;;  %v642_v12 = vpack.c.bf16 %v367_v8, %v366_v7  ;;  %v350_v13 = vld [vmem:[#allocation7 + $0x10] sm:$0xff]  ;;  %v368_v15 = vld [vmem:[#allocation7 + $0xa0] sm:$0xff]  ;;  %v373_v28 = vld [vmem:[#allocation7 + $0xc8] sm:$0xff] }
  0x67   :  { %557 = vmatpush1.bf16.msra.mxu1 %v556_v20  ;;  %v644_v17 = vpack.c.bf16 %v351_v14, %v350_v13  ;;  %v646_v18 = vpack.c.bf16 %v369_v16, %v368_v15  ;;  %v352_v19 = vld [vmem:[#allocation7 + $0x20] sm:$0xff]  ;;  %v353_v20 = vld [vmem:[#allocation7 + $0x28] sm:$0xff]  ;;  %v354_v25 = vld [vmem:[#allocation7 + $0x30] sm:$0xff] }
  0x68   :  { %559 = vmatprep.subr.bf16.mxu1 %v558_v22  ;;  %v371_v22 = vld [vmem:[#allocation7 + $0xb8] sm:$0xff]  ;;  %v648_v23 = vpack.c.bf16 %v353_v20, %v352_v19  ;;  %v372_v27 = vld [vmem:[#allocation7 + $0xc0] sm:$0xff]  ;;  %v358_v37 = vld [vmem:[#allocation7 + $0x50] sm:$0xff] }
  0x69   :  { %621 = vmatpush1.bf16.msra.mxu0 %v620_v21  ;;  %v370_v21 = vld [vmem:[#allocation7 + $0xb0] sm:$0xff]  ;;  %v654_v30 = vpack.c.bf16 %v373_v28, %v372_v27  ;;  %v356_v31 = vld [vmem:[#allocation7 + $0x40] sm:$0xff]  ;;  %v377_v41 = vld [vmem:[#allocation7 + $0xe8] sm:$0xff] }
  0x6a   :  { %623 = vmatprep.subr.bf16.mxu0 %v622_v26  ;;  %v650_v24 = vpack.c.bf16 %v371_v22, %v370_v21  ;;  %v355_v26 = vld [vmem:[#allocation7 + $0x38] sm:$0xff]  ;;  %v376_v40 = vld [vmem:[#allocation7 + $0xe0] sm:$0xff]  ;;  %v362_v49 = vld [vmem:[#allocation7 + $0x70] sm:$0xff] }
  0x6b   :  { %561 = vmatpush1.bf16.msra.mxu1 %v560_v32  ;;  %v652_v29 = vpack.c.bf16 %v355_v26, %v354_v25  ;;  %v357_v32 = vld [vmem:[#allocation7 + $0x48] sm:$0xff]  ;;  %v662_v42 = vpack.c.bf16 %v377_v41, %v376_v40  ;;  %v360_v43 = vld [vmem:[#allocation7 + $0x60] sm:$0xff]  ;;  %v379_v47 = vld [vmem:[#allocation7 + $0xf8] sm:$0xff] }
  0x6c   :  { %563 = vmatprep.subr.bf16.mxu1 %v562_v34  ;;  %v375_v34 = vld [vmem:[#allocation7 + $0xd8] sm:$0xff]  ;;  %v656_v35 = vpack.c.bf16 %v357_v32, %v356_v31  ;;  %v192_v55 = vld [vmem:[%s870_s2] sm:$0x3]  ;;  %s783_s2 = smov [#allocation8]  }
  0x6d   :  { %625 = vmatpush1.bf16.msra.mxu0 %v624_v33  ;;  %v374_v33 = vld [vmem:[#allocation7 + $0xd0] sm:$0xff]  ;;  %v474_v6 = vld [vmem:[%s872_s4] ss:$0 sm:$0xff]  ;;  %s464_s9 = sshll.u32 %s783_s2, 4  ;;  %s465_s9 = int_to_ptr.vmem [resolvable:$true] %s464_s9 }
  0x6e   :  { %627 = vmatprep.subr.bf16.mxu0 %v626_v38  ;;  %v658_v36 = vpack.c.bf16 %v375_v34, %v374_v33  ;;  %v359_v38 = vld [vmem:[#allocation7 + $0x58] sm:$0xff]  ;;  %s748_s10 = scalar_lea.vmem %s465_s9, 128  ;;  %p753_p11 = scmp.lt.s32.totalorder %s465_s9, %s465_s9 }
  0x6f   :  { %565 = vmatpush1.bf16.msra.mxu1 %v564_v44  ;;  %v660_v39 = vpack.c.bf16 %v359_v38, %v358_v37  ;;  %v361_v44 = vld [vmem:[#allocation7 + $0x68] sm:$0xff]  ;;  %p749_p10 = scmp.ne.s32.totalorder %s465_s9, %s748_s10  ;;  %p754_p12 = scmp.lt.s32.totalorder %s748_s10, %s748_s10 }
  0x70   :  { %567 = vmatprep.subr.bf16.mxu1 %v566_v46  ;;  %v378_v46 = vld [vmem:[#allocation7 + $0xf0] sm:$0xff] }
  0x71   :  { %629 = vmatpush1.bf16.msra.mxu0 %v628_v45  ;;  %v664_v45 = vpack.c.bf16 %v361_v44, %v360_v43  ;;  %v666_v48 = vpack.c.bf16 %v379_v47, %v378_v46  ;;  %p755_p13 = por %p754_p12, %p753_p11 }
  0x72   :  { %631 = vmatprep.subr.bf16.mxu0 %v630_v50  ;;  %v363_v50 = vld [vmem:[#allocation7 + $0x78] sm:$0xff] }
  0x73   :  { %569 = vmatpush1.bf16.msra.mxu1 %v568_v56  ;;  %v668_v51 = vpack.c.bf16 %v363_v50, %v362_v49  ;;  %v200_v56 = vsub.s32 1, %v195_v53  ;;  %p756_p0 = pnand %p755_p13, %p749_p10 }
  0x74   :  { %571 = vmatprep.subr.bf16.mxu1 %v570_v58 }
  0x75   :  { %633 = vmatpush1.bf16.msra.mxu0 %v632_v57  ;;  %v197_v57 = vrot.slane %v192_v55, %v196_v54  ;;  %v201_v58 = vrot.slane %v192_v55, %v200_v56 }
  0x76   :  { %635 = vmatprep.subr.bf16.mxu0 %v634_v62 }
  0x77   :  { %573 = vmatpush1.bf16.msra.mxu1 %v572_v2 }
  0x78   :  { %639 = vmatprep.subr.bf16.mxu1 %v638_v4 }
  0x79   :  { %637 = vmatpush1.bf16.msra.mxu0 %v636_v3 }
  0x7a   :  { %269 = vmatmul.mubr.f32.vlgmr.msra.gmra.mrb[0].mxu1 %v60_v9 }
  0x7b   :  { %641 = vmatpush3.bf16.msra.mxu1 %v640_v10 }
  0x7c   :  { %340 = vmatmul.mubr.f32.vlgmr.msra.gmra.mrb[0].mxu0 %v62_v11  ;;  %643 = vmatprep.subr.bf16.mxu1 %v642_v12 }
  0x7f   :  { %645 = vmatpush3.bf16.msra.mxu1 %v644_v17 }
  0x80   :  { %647 = vmatprep.subr.bf16.mxu1 %v646_v18 }
  0x83   :  { %649 = vmatpush3.bf16.msra.mxu1 %v648_v23 }
  0x84   :  { %651 = vmatprep.subr.bf16.mxu1 %v650_v24 }
  0x87   :  { %653 = vmatpush3.bf16.msra.mxu1 %v652_v29 }
  0x88   :  { %655 = vmatprep.subr.bf16.mxu1 %v654_v30 }
  0x8b   :  { %657 = vmatpush3.bf16.msra.mxu1 %v656_v35 }
  0x8c   :  { %659 = vmatprep.subr.bf16.mxu1 %v658_v36 }
  0x8f   :  { %661 = vmatpush3.bf16.msra.mxu1 %v660_v39 }
  0x90   :  { %663 = vmatprep.subr.bf16.mxu1 %v662_v42 }
  0x93   :  { %665 = vmatpush3.bf16.msra.mxu1 %v664_v45 }
  0x94   :  { %667 = vmatprep.subr.bf16.mxu1 %v666_v48 }
  0x97   :  { %669 = vmatpush3.bf16.msra.mxu1 %v668_v51 }
 0x14d   :  { %v270_v59 = vpop.f32.mrb[0].mxu1 }
 0x14e   :  { %v271_v60 = vadd.f32 %v270_v59, %v197_v57  ;;  %v272_v61 = vpop.f32.mrb[1].mxu1 }
 0x14f   :  { %v341_v62 = vpop.f32.mrb[0].mxu0  ;;  %v273_v63 = vadd.f32 %v272_v61, %v201_v58 }
 0x150   :  { %v343_v0 = vpop.f32.mrb[1].mxu0  ;;  %v342_v1 = vadd.f32 %v341_v62, %v271_v60 }
 0x151   :  { %v344_v2 = vadd.f32 %v343_v0, %v273_v63 }
 0x152   :  { %v346_v4 = vmax.f32 %v342_v1, 0.0 }
 0x153   :  { %v347_v3 = vmax.f32 %v344_v2, 0.0 }
 0x155   :  { %451 = vmatprep.mubr.f32.mxu1 %v347_v3 }
 0x156   :  { %452 = vmatmul.mubr.f32.vlgmr.msra.gmra.mrb[2].mxu1 %v346_v4 }
 0x229   :  { %v507_v5 = vpop.f32.mrb[2].mxu1 }
 0x22a   :  { %v508_v7 = vpop.f32.mrb[3].mxu1 }
 0x22b   :  { %v509_v8 = vadd.f32 %v508_v7, %v507_v5 }
 0x22d   :  { %v454_v9 = vadd.f32 %v509_v8, %v474_v6 }
 0x22f   :  { %457 = vst [vmem:[#allocation8] sm:$0xff] %v454_v9 }
 0x230   :  { %759 = shalt.err (!%p756_p0)
}
 0x231   :  { %s760_s13 = scalar_lea.hbm %s873_s5, 128 }
 0x232   :  { %p761_p1 = scmp.ne.s32.totalorder %s873_s5, %s760_s13  ;;  %p764_p2 = scmp.lt.u32.totalorder %s760_s13, %s873_s5 }
 0x234   :  { %p766_p3 = pnand %p764_p2, %p761_p1 }
 0x236   :  { %769 = shalt.err (!%p766_p3)
}
 0x237   :  { %467 = dma.vmem_to_hbm [thread:$0]  %s465_s9, 128, %s873_s5, [#allocation4]  }
 0x238   :  { %774 = dma.done.wait [#allocation4], 128  }
 0x239   :  { %775 = vsyncadd [#allocation4], 4294967168 }
 0x23a   :  { %471 = vsyncpa [#allocation3], 1 }
 0x23b   :  { %472 = vsyncpa [#allocation6], 1 }
 0x23c   :  { %473 = vsyncpa [#allocation4], 1 }

</bundles_post_ra>
